<compile_context>
chip_gen: v7x
topology: tpu7x:2x2x1
jax: 0.10.0
libtpu: 0.0.40
codegen_flags: <defaults>
</compile_context>

<pallas_src>
import functools

import jax
import jax.numpy as jnp
from jax import lax
from jax.experimental import pallas as pl
from jax.experimental.pallas import tpu as pltpu


def _vmem_capacity_bytes():
    try:
        cap = getattr(pltpu.get_tpu_info(), "vmem_capacity_bytes", None)
        if cap:
            return int(cap)
    except Exception:
        pass
    return 64 * (1 << 20)   # conservative default (v7x per-TensorCore VMEM)


# --------------------------------------------------------------------------
# Kernel: for a tile of tp SELECTED query points, compute squared distances to
# all V vertices (pure VPU), mask out self, peel the neighbor_num nearest
# (lowest-index tie-break), gather their features with a single stacked
# one-hot matmul on the MXU, and max-pool over neighbors.
# --------------------------------------------------------------------------
def _knn_pool_kernel(sel_ref, q_ref, vt_ref, fm_ref, out_ref, *, neighbor_num):
    sel = sel_ref[0]        # (tp, 1) int32  global index of each query row
    Q   = q_ref[0]          # (tp, 3)        query (selected) coordinates
    Vt  = vt_ref[0]         # (3, v)         all coordinates, lane-dense
    FM  = fm_ref[0]         # (v, c)         all features (batch-resident)

    tp = Q.shape[0]
    v = Vt.shape[1]

    # ---- pairwise squared distances (pure VPU, no depth-3 MXU matmul) ----
    diff = Q[:, 0:1] - Vt[0:1, :]
    D = diff * diff
    for d in range(1, 3):
        diff = Q[:, d:d + 1] - Vt[d:d + 1, :]
        D = D + diff * diff                                       # (tp, v)

    col_iota = lax.broadcasted_iota(jnp.int32, (tp, v), 1)
    # Exclude self explicitly (the reference drops topk index 0 == the vertex
    # itself); avoids relying on an exact-zero diagonal and saves one peel.
    D = jnp.where(sel == col_iota, jnp.inf, D)

    # ---- peel the neighbor_num smallest, lowest-index tie-break ----
    # TODO(synk): fuse the min + masked-index-min into a single argmin pass
    # once argmin lowering is confirmed across all target Mosaic versions.
    idxs = []
    Dm = D
    for _ in range(neighbor_num):
        minval = jnp.min(Dm, axis=-1, keepdims=True)              # (tp, 1)
        idx = jnp.min(jnp.where(Dm == minval, col_iota, v),
                      axis=-1, keepdims=True)                     # first argmin
        Dm = jnp.where(idx == col_iota, jnp.inf, Dm)
        idxs.append(idx)

    # ---- single stacked one-hot gather on the MXU, then max over neighbors ----
    idx_cat = jnp.concatenate(idxs, axis=0)                       # (nn*tp, 1)
    stacked = (idx_cat == lax.broadcasted_iota(
        jnp.int32, (neighbor_num * tp, v), 1)).astype(jnp.float32)
    gathered = jnp.dot(stacked, FM.astype(jnp.float32),
                       preferred_element_type=jnp.float32)        # (nn*tp, c)
    pooled = gathered[0:tp]
    for k in range(1, neighbor_num):
        pooled = jnp.maximum(pooled, gathered[k * tp:(k + 1) * tp])
    out_ref[0] = pooled.astype(out_ref.dtype)


# --------------------------------------------------------------------------
# On-device bucketize + per-bin uniform sampling without replacement
# (replaces the torch.bucketize / torch.multinomial host glue).
# --------------------------------------------------------------------------
def _probabilistic_sampling(normalized, pooling_rate, num_bins, key):
    # TODO(synk): matches the torch semantics (floor counts, sequential per-bin
    # fill, zeros for unfilled slots) but the random stream cannot bit-match
    # torch.multinomial; uses a random-rank trick with jax.random instead.
    bs, v = normalized.shape
    total = int(v // pooling_rate)
    edges = jnp.linspace(0.0, 1.0, num_bins + 1)
    # torch.bucketize(right=False) == searchsorted(side='left'); values in 0..num_bins
    bin_idx = jnp.searchsorted(edges, normalized, side="left").astype(jnp.int32)

    bins_1 = jnp.arange(1, num_bins + 1, dtype=jnp.int32)
    counts = (bin_idx[:, :, None] == bins_1[None, None, :]).sum(axis=1)          # (bs, nb)
    n_per_bin = jnp.floor(counts.astype(jnp.float32)
                          / counts.sum(axis=1, keepdims=True).astype(jnp.float32)
                          * total).astype(jnp.int32)                             # (bs, nb)
    offsets = jnp.concatenate(
        [jnp.zeros((bs, 1), jnp.int32), jnp.cumsum(n_per_bin, axis=1)[:, :-1]], axis=1)

    # random rank within each bin == uniform sampling without replacement
    u = jax.random.uniform(key, (bs, v))
    order = jnp.argsort(bin_idx.astype(jnp.float32) * 2.0 + u, axis=1)           # (bs, v)
    sorted_bin = jnp.take_along_axis(bin_idx, order, axis=1)                     # (bs, v)

    bins_all = jnp.arange(0, num_bins + 1, dtype=jnp.int32)
    count_all = (bin_idx[:, :, None] == bins_all[None, None, :]).sum(axis=1)     # (bs, nb+1)
    start_all = jnp.concatenate(
        [jnp.zeros((bs, 1), count_all.dtype), jnp.cumsum(count_all, axis=1)[:, :-1]], axis=1)
    rank_in_bin = (jnp.arange(v, dtype=jnp.int32)[None, :]
                   - jnp.take_along_axis(start_all, sorted_bin, axis=1).astype(jnp.int32))

    n_pad = jnp.concatenate([jnp.zeros((bs, 1), jnp.int32), n_per_bin], axis=1)
    off_pad = jnp.concatenate([jnp.zeros((bs, 1), jnp.int32), offsets], axis=1)
    budget = jnp.take_along_axis(n_pad, sorted_bin, axis=1)
    out_off = jnp.take_along_axis(off_pad, sorted_bin, axis=1)

    selectable = (sorted_bin >= 1) & (rank_in_bin < budget)
    out_pos = jnp.where(selectable, out_off + rank_in_bin, total)   # dump rejects to slot `total`
    selected = jnp.zeros((bs, total + 1), jnp.int32)
    selected = selected.at[jnp.arange(bs)[:, None], out_pos].set(order.astype(jnp.int32))
    return selected[:, :total]


# --------------------------------------------------------------------------
# Chip-aware row-tile selection (VMEM-bounded, keeps both v7x TCs busy)
# --------------------------------------------------------------------------
def _choose_row_tile(p, v, c, neighbor_num, vmem_cap, bs):
    # batch-resident blocks (double-buffered by the default pipeline)
    resident = (2 * v * c + 2 * 3 * v) * 4
    budget = max(int(0.55 * vmem_cap) - resident, 4 * (1 << 20))
    # live per-row f32 bytes: ~4 (tp, v) peel temporaries + stacked one-hot rows
    per_row = (4 + neighbor_num) * v * 4 + 4 * c * 4
    max_rows = max(8, budget // per_row)

    tp = p
    if p > max_rows:
        t = max(8, (max_rows // 8) * 8)
        while t > 8 and p % t != 0:
            t -= 8
        tp = t if p % t == 0 else p  # TODO(synk): pad/mask ragged row tiles instead
    # give both v7x TensorCores work at batch size 1
    if bs == 1 and tp == p and p % 16 == 0:
        tp = p // 2
    return tp


# --------------------------------------------------------------------------
# Full Pool_layer.forward (single jit, no host sync)
# --------------------------------------------------------------------------
@functools.partial(jax.jit, static_argnames=("pooling_rate", "neighbor_num", "num_bins"))
def _pool_layer_forward_impl(vertices, feature_map, neighbor_index_density, key,
                             pooling_rate, neighbor_num, num_bins):
    bs, v, _ = vertices.shape
    c = feature_map.shape[-1]

    # 1) density distances in plain XLA (gather of bs*V*20*3 coords + norm)
    nbr = jax.vmap(lambda verts, idx: verts[idx])(vertices, neighbor_index_density)
    d3 = vertices[:, :, None, :] - nbr                                    # (bs, V, 20, 3)
    summed = jnp.sum(jnp.sqrt(jnp.sum(d3 * d3, axis=-1)), axis=-1)        # (bs, V)

    # 2) normalize_distances_within_batch + probabilistic_sampling (on device)
    mn = jnp.min(summed, axis=1, keepdims=True)
    mx = jnp.max(summed, axis=1, keepdims=True)
    normalized = (summed - mn) / jnp.where(mx > mn, mx - mn, 1.0)
    selected = _probabilistic_sampling(normalized, pooling_rate, num_bins, key)  # (bs, p)
    p = selected.shape[1]

    # 3) pooled vertices: trivial XLA gather
    vertices_pool = jnp.take_along_axis(vertices, selected[:, :, None], axis=1)  # (bs, p, 3)

    # 4) kNN + neighbor max-pool, ONLY on the p selected rows (Pallas kernel)
    q = vertices_pool.astype(jnp.float32)                                 # (bs, p, 3)
    vertices_t = jnp.swapaxes(vertices, 1, 2).astype(jnp.float32)         # (bs, 3, V)
    sel3 = selected[:, :, None]                                           # (bs, p, 1)

    vmem_cap = _vmem_capacity_bytes()
    tp = _choose_row_tile(p, v, c, neighbor_num, vmem_cap, bs)
    n_tiles = p // tp

    est_vmem = ((4 + neighbor_num) * tp * v      # peel temporaries + stacked one-hot
                + 2 * v * c + 2 * 3 * v          # resident feature / coord blocks
                + 4 * tp * c + 4 * tp) * 4
    vmem_limit = None
    if est_vmem > 10 * (1 << 20):
        vmem_limit = int(min(est_vmem * 3 // 2, int(0.85 * vmem_cap)))

    kernel = functools.partial(_knn_pool_kernel, neighbor_num=neighbor_num)
    feature_map_pool = pl.pallas_call(
        kernel,
        grid=(bs, n_tiles),
        in_specs=[
            pl.BlockSpec((1, tp, 1), lambda b, r: (b, r, 0)),    # selected indices (self mask)
            pl.BlockSpec((1, tp, 3), lambda b, r: (b, r, 0)),    # query coordinates
            pl.BlockSpec((1, 3, v), lambda b, r: (b, 0, 0)),     # all coords, lane-dense
            pl.BlockSpec((1, v, c), lambda b, r: (b, 0, 0)),     # features, batch-resident
        ],
        out_specs=pl.BlockSpec((1, tp, c), lambda b, r: (b, r, 0)),
        out_shape=jax.ShapeDtypeStruct((bs, p, c), feature_map.dtype),
        compiler_params=pltpu.CompilerParams(
            dimension_semantics=("parallel", "parallel"),
            vmem_limit_bytes=vmem_limit),
    )(sel3, q, vertices_t, feature_map)

    return vertices_pool, feature_map_pool


def pool_layer_forward(vertices, feature_map, neighbor_index_density, *,
                       pooling_rate=4, neighbor_num=4, num_bins=3, key=None):
    if key is None:
        key = jax.random.PRNGKey(0)
    return _pool_layer_forward_impl(
        vertices, feature_map, neighbor_index_density, key,
        pooling_rate=pooling_rate, neighbor_num=neighbor_num, num_bins=num_bins)


if __name__ == "__main__":
    bs, v, c, dk = 2, 32, 16, 20
    pooling_rate, neighbor_num = 4, 4

    key = jax.random.PRNGKey(0)
    k1, k2, k3, k4 = jax.random.split(key, 4)
    vertices = jax.random.normal(k1, (bs, v, 3), dtype=jnp.float32)
    feature_map = jax.random.normal(k2, (bs, v, c), dtype=jnp.float32)
    neighbor_index_density = jax.random.randint(k3, (bs, v, dk), 0, v, dtype=jnp.int32)

    vp, fp = pool_layer_forward(
        vertices, feature_map, neighbor_index_density,
        pooling_rate=pooling_rate, neighbor_num=neighbor_num, key=k4)
    jax.block_until_ready((vp, fp))

    assert vp.shape == (bs, v // pooling_rate, 3)
    assert fp.shape == (bs, v // pooling_rate, c)
    assert bool(jnp.all(jnp.isfinite(vp))) and bool(jnp.all(jnp.isfinite(fp)))
    print("KERNEL_OK")
</pallas_src>

<mosaic_0001>
module attributes {stable_mosaic.version = 11 : i64} {
  func.func @_knn_pool_kernel(%arg0: i32, %arg1: i32, %arg2: memref<1x8x1xi32, #tpu.memory_space<vmem>>, %arg3: memref<1x8x3xf32, #tpu.memory_space<vmem>>, %arg4: memref<1x3x32xf32, #tpu.memory_space<vmem>>, %arg5: memref<1x32x16xf32, #tpu.memory_space<vmem>>, %arg6: memref<1x8x16xf32, #tpu.memory_space<vmem>>) attributes {dimension_semantics = [#tpu.dimension_semantics<parallel>, #tpu.dimension_semantics<parallel>], iteration_bounds = array<i64: 2, 1>, scalar_prefetch = 0 : i64, scratch_operands = 0 : i64, tpu.core_type = #tpu.core_type<tc>, window_params = [{transform_indices = @transform_0, window_bounds = array<i64: 1, 8, 1>}, {transform_indices = @transform_1, window_bounds = array<i64: 1, 8, 3>}, {transform_indices = @transform_2, window_bounds = array<i64: 1, 3, 32>}, {transform_indices = @transform_3, window_bounds = array<i64: 1, 32, 16>}, {transform_indices = @transform_4, window_bounds = array<i64: 1, 8, 16>}]} {
    %c0 = arith.constant 0 : index
    %c0_0 = arith.constant 0 : index
    %c0_1 = arith.constant 0 : index
    %0 = vector.load %arg2[%c0, %c0_0, %c0_1] : memref<1x8x1xi32, #tpu.memory_space<vmem>>, vector<1x8x1xi32>
    %1 = vector.shape_cast %0 : vector<1x8x1xi32> to vector<8x1xi32>
    %c0_2 = arith.constant 0 : index
    %c0_3 = arith.constant 0 : index
    %c0_4 = arith.constant 0 : index
    %2 = vector.load %arg3[%c0_2, %c0_3, %c0_4] : memref<1x8x3xf32, #tpu.memory_space<vmem>>, vector<1x8x3xf32>
    %3 = vector.shape_cast %2 : vector<1x8x3xf32> to vector<8x3xf32>
    %c0_5 = arith.constant 0 : index
    %c0_6 = arith.constant 0 : index
    %c0_7 = arith.constant 0 : index
    %4 = vector.load %arg4[%c0_5, %c0_6, %c0_7] : memref<1x3x32xf32, #tpu.memory_space<vmem>>, vector<1x3x32xf32>
    %5 = vector.shape_cast %4 : vector<1x3x32xf32> to vector<3x32xf32>
    %c0_8 = arith.constant 0 : index
    %c0_9 = arith.constant 0 : index
    %c0_10 = arith.constant 0 : index
    %6 = vector.load %arg5[%c0_8, %c0_9, %c0_10] : memref<1x32x16xf32, #tpu.memory_space<vmem>>, vector<1x32x16xf32>
    %7 = vector.shape_cast %6 : vector<1x32x16xf32> to vector<32x16xf32>
    %8 = vector.extract_strided_slice %3 {offsets = [0, 0], sizes = [8, 1], strides = [1, 1]} : vector<8x3xf32> to vector<8x1xf32>
    %9 = vector.extract_strided_slice %5 {offsets = [0, 0], sizes = [1, 32], strides = [1, 1]} : vector<3x32xf32> to vector<1x32xf32>
    %10 = vector.broadcast %8 : vector<8x1xf32> to vector<8x32xf32>
    %11 = vector.broadcast %9 : vector<1x32xf32> to vector<8x32xf32>
    %12 = arith.subf %10, %11 : vector<8x32xf32>
    %13 = arith.mulf %12, %12 : vector<8x32xf32>
    %14 = vector.extract_strided_slice %3 {offsets = [0, 1], sizes = [8, 1], strides = [1, 1]} : vector<8x3xf32> to vector<8x1xf32>
    %15 = vector.extract_strided_slice %5 {offsets = [1, 0], sizes = [1, 32], strides = [1, 1]} : vector<3x32xf32> to vector<1x32xf32>
    %16 = vector.broadcast %14 : vector<8x1xf32> to vector<8x32xf32>
    %17 = vector.broadcast %15 : vector<1x32xf32> to vector<8x32xf32>
    %18 = arith.subf %16, %17 : vector<8x32xf32>
    %19 = arith.mulf %18, %18 : vector<8x32xf32>
    %20 = arith.addf %13, %19 : vector<8x32xf32>
    %21 = vector.extract_strided_slice %3 {offsets = [0, 2], sizes = [8, 1], strides = [1, 1]} : vector<8x3xf32> to vector<8x1xf32>
    %22 = vector.extract_strided_slice %5 {offsets = [2, 0], sizes = [1, 32], strides = [1, 1]} : vector<3x32xf32> to vector<1x32xf32>
    %23 = vector.broadcast %21 : vector<8x1xf32> to vector<8x32xf32>
    %24 = vector.broadcast %22 : vector<1x32xf32> to vector<8x32xf32>
    %25 = arith.subf %23, %24 : vector<8x32xf32>
    %26 = arith.mulf %25, %25 : vector<8x32xf32>
    %27 = arith.addf %20, %26 : vector<8x32xf32>
    %28 = tpu.iota {dimensions = array<i32: 1>} : vector<8x32xi32>
    %29 = vector.broadcast %1 : vector<8x1xi32> to vector<8x32xi32>
    %30 = arith.cmpi eq, %29, %28 : vector<8x32xi32>
    %cst = arith.constant 0x7F800000 : f32
    %31 = vector.broadcast %cst : f32 to vector<8x32xf32>
    %32 = arith.select %30, %31, %27 : vector<8x32xi1>, vector<8x32xf32>
    %cst_11 = arith.constant dense<0x7F800000> : vector<8xf32>
    %33 = vector.multi_reduction <minimumf>, %32, %cst_11 [1] : vector<8x32xf32> to vector<8xf32>
    %34 = vector.shape_cast %33 : vector<8xf32> to vector<8x1xf32>
    %35 = vector.broadcast %34 : vector<8x1xf32> to vector<8x32xf32>
    %36 = arith.cmpf oeq, %32, %35 : vector<8x32xf32>
    %c32_i32 = arith.constant 32 : i32
    %37 = vector.broadcast %c32_i32 : i32 to vector<8x32xi32>
    %38 = arith.select %36, %28, %37 : vector<8x32xi1>, vector<8x32xi32>
    %cst_12 = arith.constant dense<2147483647> : vector<8xi32>
    %39 = vector.multi_reduction <minsi>, %38, %cst_12 [1] : vector<8x32xi32> to vector<8xi32>
    %40 = vector.shape_cast %39 : vector<8xi32> to vector<8x1xi32>
    %41 = vector.broadcast %40 : vector<8x1xi32> to vector<8x32xi32>
    %42 = arith.cmpi eq, %41, %28 : vector<8x32xi32>
    %cst_13 = arith.constant 0x7F800000 : f32
    %43 = vector.broadcast %cst_13 : f32 to vector<8x32xf32>
    %44 = arith.select %42, %43, %32 : vector<8x32xi1>, vector<8x32xf32>
    %cst_14 = arith.constant dense<0x7F800000> : vector<8xf32>
    %45 = vector.multi_reduction <minimumf>, %44, %cst_14 [1] : vector<8x32xf32> to vector<8xf32>
    %46 = vector.shape_cast %45 : vector<8xf32> to vector<8x1xf32>
    %47 = vector.broadcast %46 : vector<8x1xf32> to vector<8x32xf32>
    %48 = arith.cmpf oeq, %44, %47 : vector<8x32xf32>
    %c32_i32_15 = arith.constant 32 : i32
    %49 = vector.broadcast %c32_i32_15 : i32 to vector<8x32xi32>
    %50 = arith.select %48, %28, %49 : vector<8x32xi1>, vector<8x32xi32>
    %cst_16 = arith.constant dense<2147483647> : vector<8xi32>
    %51 = vector.multi_reduction <minsi>, %50, %cst_16 [1] : vector<8x32xi32> to vector<8xi32>
    %52 = vector.shape_cast %51 : vector<8xi32> to vector<8x1xi32>
    %53 = vector.broadcast %52 : vector<8x1xi32> to vector<8x32xi32>
    %54 = arith.cmpi eq, %53, %28 : vector<8x32xi32>
    %cst_17 = arith.constant 0x7F800000 : f32
    %55 = vector.broadcast %cst_17 : f32 to vector<8x32xf32>
    %56 = arith.select %54, %55, %44 : vector<8x32xi1>, vector<8x32xf32>
    %cst_18 = arith.constant dense<0x7F800000> : vector<8xf32>
    %57 = vector.multi_reduction <minimumf>, %56, %cst_18 [1] : vector<8x32xf32> to vector<8xf32>
    %58 = vector.shape_cast %57 : vector<8xf32> to vector<8x1xf32>
    %59 = vector.broadcast %58 : vector<8x1xf32> to vector<8x32xf32>
    %60 = arith.cmpf oeq, %56, %59 : vector<8x32xf32>
    %c32_i32_19 = arith.constant 32 : i32
    %61 = vector.broadcast %c32_i32_19 : i32 to vector<8x32xi32>
    %62 = arith.select %60, %28, %61 : vector<8x32xi1>, vector<8x32xi32>
    %cst_20 = arith.constant dense<2147483647> : vector<8xi32>
    %63 = vector.multi_reduction <minsi>, %62, %cst_20 [1] : vector<8x32xi32> to vector<8xi32>
    %64 = vector.shape_cast %63 : vector<8xi32> to vector<8x1xi32>
    %65 = vector.broadcast %64 : vector<8x1xi32> to vector<8x32xi32>
    %66 = arith.cmpi eq, %65, %28 : vector<8x32xi32>
    %cst_21 = arith.constant 0x7F800000 : f32
    %67 = vector.broadcast %cst_21 : f32 to vector<8x32xf32>
    %68 = arith.select %66, %67, %56 : vector<8x32xi1>, vector<8x32xf32>
    %cst_22 = arith.constant dense<0x7F800000> : vector<8xf32>
    %69 = vector.multi_reduction <minimumf>, %68, %cst_22 [1] : vector<8x32xf32> to vector<8xf32>
    %70 = vector.shape_cast %69 : vector<8xf32> to vector<8x1xf32>
    %71 = vector.broadcast %70 : vector<8x1xf32> to vector<8x32xf32>
    %72 = arith.cmpf oeq, %68, %71 : vector<8x32xf32>
    %c32_i32_23 = arith.constant 32 : i32
    %73 = vector.broadcast %c32_i32_23 : i32 to vector<8x32xi32>
    %74 = arith.select %72, %28, %73 : vector<8x32xi1>, vector<8x32xi32>
    %cst_24 = arith.constant dense<2147483647> : vector<8xi32>
    %75 = vector.multi_reduction <minsi>, %74, %cst_24 [1] : vector<8x32xi32> to vector<8xi32>
    %76 = vector.shape_cast %75 : vector<8xi32> to vector<8x1xi32>
    %77 = tpu.concatenate %40, %52, %64, %76 in 0 : vector<8x1xi32>, vector<8x1xi32>, vector<8x1xi32>, vector<8x1xi32> -> vector<32x1xi32>
    %78 = tpu.iota {dimensions = array<i32: 1>} : vector<32x32xi32>
    %79 = vector.broadcast %77 : vector<32x1xi32> to vector<32x32xi32>
    %80 = arith.cmpi eq, %79, %78 : vector<32x32xi32>
    %81 = arith.extui %80 : vector<32x32xi1> to vector<32x32xi32>
    %82 = arith.sitofp %81 : vector<32x32xi32> to vector<32x32xf32>
    %cst_25 = arith.constant dense<0.000000e+00> : vector<32x16xf32>
    %83 = tpu.matmul %82, %7, %cst_25 {dimension_numbers = #tpu.dot_dimension_numbers<[1], [0], [0], [1], [0, 0, 1, 1], [], []>} : vector<32x32xf32>, vector<32x16xf32>, vector<32x16xf32> -> vector<32x16xf32>
    %84 = vector.extract_strided_slice %83 {offsets = [0, 0], sizes = [8, 16], strides = [1, 1]} : vector<32x16xf32> to vector<8x16xf32>
    %85 = vector.extract_strided_slice %83 {offsets = [8, 0], sizes = [8, 16], strides = [1, 1]} : vector<32x16xf32> to vector<8x16xf32>
    %86 = arith.maximumf %84, %85 : vector<8x16xf32>
    %87 = vector.extract_strided_slice %83 {offsets = [16, 0], sizes = [8, 16], strides = [1, 1]} : vector<32x16xf32> to vector<8x16xf32>
    %88 = arith.maximumf %86, %87 : vector<8x16xf32>
    %89 = vector.extract_strided_slice %83 {offsets = [24, 0], sizes = [8, 16], strides = [1, 1]} : vector<32x16xf32> to vector<8x16xf32>
    %90 = arith.maximumf %88, %89 : vector<8x16xf32>
    %c0_26 = arith.constant 0 : index
    %c0_27 = arith.constant 0 : index
    %c0_28 = arith.constant 0 : index
    %91 = vector.load %arg6[%c0_26, %c0_27, %c0_28] : memref<1x8x16xf32, #tpu.memory_space<vmem>>, vector<1x8x16xf32>
    %92 = vector.shape_cast %91 : vector<1x8x16xf32> to vector<8x16xf32>
    %93 = vector.shape_cast %90 : vector<8x16xf32> to vector<1x8x16xf32>
    tpu.vector_store %arg6[%c0_26, %c0_27, %c0_28], %93 {strides = array<i32>} : memref<1x8x16xf32, #tpu.memory_space<vmem>>, vector<1x8x16xf32>,
    return
  }
  func.func @transform_0(%arg0: i32, %arg1: i32) -> (i32, i32, i32) {
    %c0_i32 = arith.constant 0 : i32
    %c0_i32_0 = arith.constant 0 : i32
    return %arg0, %arg1, %c0_i32 : i32, i32, i32
  }
  func.func @transform_1(%arg0: i32, %arg1: i32) -> (i32, i32, i32) {
    %c0_i32 = arith.constant 0 : i32
    %c0_i32_0 = arith.constant 0 : i32
    return %arg0, %arg1, %c0_i32 : i32, i32, i32
  }
  func.func @transform_2(%arg0: i32, %arg1: i32) -> (i32, i32, i32) {
    %c0_i32 = arith.constant 0 : i32
    %c0_i32_0 = arith.constant 0 : i32
    %c0_i32_1 = arith.constant 0 : i32
    return %arg0, %c0_i32, %c0_i32_0 : i32, i32, i32
  }
  func.func @transform_3(%arg0: i32, %arg1: i32) -> (i32, i32, i32) {
    %c0_i32 = arith.constant 0 : i32
    %c0_i32_0 = arith.constant 0 : i32
    %c0_i32_1 = arith.constant 0 : i32
    return %arg0, %c0_i32, %c0_i32_0 : i32, i32, i32
  }
  func.func @transform_4(%arg0: i32, %arg1: i32) -> (i32, i32, i32) {
    %c0_i32 = arith.constant 0 : i32
    %c0_i32_0 = arith.constant 0 : i32
    return %arg0, %arg1, %c0_i32 : i32, i32, i32
  }
}

</mosaic_0001>

<bundles_post_ra>
// kernel: custom-call.14
= control target key start
LH: loop header
LB: loop body
LE: loop exit
PB: predicated region body
PF: predicated region fallthrough
CT: control target
= control target key end

     0   :  { %s6_s0 = inlined_call_operand.vmem [shape: u32[2,32], index: 0, kind: output, shape index: {}]  }

// kernel: squeeze.8
= control target key start
LH: loop header
LB: loop body
LE: loop exit
PB: predicated region body
PF: predicated region fallthrough
CT: control target
= control target key end

     0   :  { %vm7_vm0 = vcmask 261120   ;;  %s39_s0 = inlined_call_operand.vmem [shape: f32[64], index: 0, kind: input, shape index: {}]   ;;  %s40_s1 = inlined_call_operand.vmem [shape: f32[2,32], index: 1, kind: output, shape index: {}]  }
   0x1   :  { %v4_v0 = vld [vmem:[%s39_s0] sm:$0x1]  ;;  %s22_s0 = smov 96  }
   0x2   :  { %5 = vst [vmem:[#allocation1] sm:$0x1] %v4_v0 }
   0x9   :  { %v9_v1 = vld [vmem:[#allocation1] sm:$0x1]  }
   0xa   :  { %v6_v2 = vld [vmem:[#allocation1] sm:$0x1]   ;;  %10 = vrot.lane.b32.xlu0 %v9_v1, %s22_s0 }
   0xb   :  { %8 = vst.msk [vmem:[#allocation0] sm:$0x1] %vm7_vm0, %v6_v2  }
  0x7c   :  { %v11_v3 = vpop.permute.xlu0 %10  }
  0x7d   :  { %14 = vst.msk [vmem:[#allocation0 + $0x1] sm:$0x1] %vm7_vm0, %v11_v3  }
  0x84   :  { %v18_v4 = vld [vmem:[#allocation0] sm:$0x3] }
  0x85   :  { %20 = vst [vmem:[%s40_s1] sm:$0x3] %v18_v4 }

// kernel: _pool_layer_forward_impl.1
= control target key start
LH: loop header
LB: loop body
LE: loop exit
PB: predicated region body
PF: predicated region fallthrough
CT: control target
= control target key end

     0   :  { %9 = vsyncpa [#allocation3], 0  ;;  %s1052_s0 = inlined_call_operand.vmem [shape: s32[2,8,1], index: 0, kind: input, shape index: {}]   ;;  %s1053_s1 = inlined_call_operand.vmem [shape: f32[2,8,3], index: 1, kind: input, shape index: {}]   ;;  %s1054_s2 = inlined_call_operand.vmem [shape: f32[2,3,32], index: 2, kind: input, shape index: {}]   ;;  %s1055_s3 = inlined_call_operand.vmem [shape: f32[2,32,16], index: 3, kind: input, shape index: {}]   ;;  %s1056_s4 = inlined_call_operand.hbm [shape: f32[2,8,16], index: 4, kind: output, shape index: {}]  }
   0x1   :  { %11 = vsyncpa [#allocation3 + $0x1], 0  ;;  %s900_s15 = smov 0   ;;  %s902_s16 = smov 0  }
   0x2   :  { %s904_s17 = smov 0   ;;  %s906_s18 = smov 0  }
   0x3   :  { %s908_s19 = smov 0   ;;  %s910_s20 = smov 0  }
   0x4 LB: > { %s668_s21 = sadd.s32 4294967295, %s868_s20   ;;  %s669_s22 = sadd.s32 4294967294, %s868_s20   ;;  %s868_s20 = sphi %s910_s20, %s17_s20   ;;  %s864_s19 = sphi %s908_s19, %s1063_s19   ;;  %s860_s18 = sphi %s906_s18, %s1062_s18   ;;  %s856_s17 = sphi %s904_s17, %s1061_s17   ;;  %s852_s16 = sphi %s902_s16, %s1060_s16   ;;  %s848_s15 = sphi %s900_s15, %s1059_s15  }
   0x5   : > { %s29_s23 = sadd.s32 1, %s864_s19  ;;  %s146_s24 = sadd.s32 1, %s856_s17 }
   0x6   : > { %p31_p0 = scmp.ge.s32.totalorder %s29_s23, 2  ;;  %p156_p1 = scmp.ne.s32.totalorder %s856_s17, %s852_s16 }
   0x7   : > { %p157_p2 = scmp.eq.s32.totalorder %s668_s21, 1  ;;  %p162_p3 = scmp.ne.s32.totalorder %s852_s16, %s848_s15 }
   0x8   : > { %s1065_s23 = smov (%p31_p0, %s29_s23), 0  ;;  %p163_p5 = scmp.eq.s32.totalorder %s669_s22, 1 }
   0x9   : > { %p940_p4 = por %p157_p2, %p156_p1  ;;  %s141_s26 = ssub.s32 %s864_s19, %s1065_s23 }
   0xa   : > { %p672_p6 = scmp.ge.s32.totalorder %s868_s20, 1  ;;  %p144_p7 = scmp.eq.s32.totalorder %s141_s26, 0 }
   0xb   : > { %p947_p8 = por %p163_p5, %p162_p3  ;;  %p216_p9 = scmp.lt.s32.totalorder %s868_s20, 3 }
   0xc   : > { %s953_s28 = scalar_select %p144_p7, %s856_s17, %s146_s24  }
   0xd   : > { %p217_p10 = pnand %p672_p6, %p216_p9 }
   0xe   : > { %p260_p11 = scmp.lt.s32.totalorder (!%p217_p10), %s860_s18, 1  ;;  %v870_v0 = vmov (!%p217_p10), 0   ;;  %v871_v1 = vmov (!%p217_p10), 2   ;;  %v872_v4 = vmov (!%p217_p10), 1   ;;  %v295_v5 = vlaneseq (!%p217_p10)  ;;  %s688_s5 = sshll.u32 (!%p217_p10), %s860_s18, 7 }
   0xf   : > { %220 = sbr.rel (%p217_p10) target bundleno = 2296 (0x8f8), region = 36  ;;  %785 = vset.pattern.permute.xlu0 (!%p217_p10), %v870_v0  ;;  %787 = vset.pattern.permute.xlu1 (!%p217_p10), %v871_v1  ;;  %vm330_vm1 = vcmask (!%p217_p10), 261120  }
  0x10   : > { %v296_v6 = vshrl.u32 (!%p217_p10), %v295_v5, 7  ;;  %v970_v20 = vand.u32 (!%p217_p10), 127, %v295_v5 }
  0x12   : > { %v297_v7 = vsub.s32 (!%p217_p10), 0, %v296_v6  ;;  %v318_v8 = vsub.s32 (!%p217_p10), 2, %v296_v6  ;;  %v307_v10 = vsub.s32 (!%p217_p10), 1, %v296_v6 }
  0x16   : > { %s957_s29 = scalar_select %p260_p11, %s860_s18, 1 }
  0x17   : > { %s874_s18 = smov [#allocation2]  }
  0x18   : > { %s674_s30 = sshll.u32 %s957_s29, 3  ;;  %s676_s11 = sshll.u32 %s957_s29, 2 }
  0x19   : > { %s273_s7 = scalar_lea.vmem %s1053_s1, %s674_s30  ;;  %s266_s10 = scalar_lea.vmem %s1052_s0, %s674_s30 }
  0x1a   : > { %v284_v2 = vld [vmem:[%s273_s7] sm:$0xff]  ;;  %s277_s14 = scalar_lea.vmem %s1054_s2, %s676_s11  ;;  %s691_s21 = sshll.u32 %s957_s29, 5 }
  0x1b   : > { %292 = vperm.xlu0 %785, %v284_v2   ;;  %313 = vperm.xlu1 %787, %v284_v2   ;;  %v283_v3 = vld [vmem:[%s266_s10] sm:$0xff]  ;;  %s282_s26 = scalar_lea.vmem %s1055_s3, %s691_s21  ;;  %s257_s29 = sand.u32 1, %s852_s16  }
  0x1c   : > { %v285_v9 = vld [vmem:[%s277_s14] sm:$0x7]  ;;  %s673_s30 = sshll.u32 %s257_s29, 3  ;;  %s1005_s10 = scalar_lea.hbm %s1056_s4, %s688_s5 }
  0x1d   : > { %v298_v11 = vrot.slane %v285_v9, %v297_v7  ;;  %v319_v13 = vrot.slane %v285_v9, %v318_v8  ;;  %v308_v15 = vrot.slane %v285_v9, %v307_v10  ;;  %s259_s6 = scalar_lea.vmem [#allocation2], %s673_s30  ;;  %s544_s11 = scalar_lea.sflag [#allocation3], %s257_s29 }
  0x1e   : > { %s558_s7 = sshll.u32 %s259_s6, 4  ;;  %s794_s13 = sshll.u32 %s874_s18, 4  ;;  %s1007_s7 = int_to_ptr.vmem [resolvable:$true] %s558_s7  ;;  %s795_s13 = int_to_ptr.vmem [resolvable:$false] %s794_s13 }
  0x1f   : > { %786 = vset.pattern.permute.xlu0 %v872_v4  ;;  %788 = vset.pattern.permute.xlu1 %v870_v0  ;;  %s790_s12 = scalar_lea.vmem %s1007_s7, 128  ;;  %s796_s14 = scalar_lea.vmem %s795_s13, 256 }
  0x20   : > { %302 = vperm.xlu0 %786, %v284_v2   ;;  %326 = vperm.xlu1 %788, %v283_v3   ;;  %p791_p12 = scmp.ne.s32.totalorder %s1007_s7, %s790_s12  ;;  %p797_p1 = scmp.lt.s32.totalorder %s1007_s7, %s795_s13 }
  0x21   : > { %p798_p2 = scmp.lt.s32.totalorder %s796_s14, %s790_s12 }
  0x22   : > { %p792_p13 = pnand %p791_p12, %p940_p4 }
  0x23   : > { %p799_p3 = por %p798_p2, %p797_p1 }
  0x24   : > { %789 = vset.pattern.permute.xlu0 %v870_v0  ;;  %p793_p0 = pneg %p792_p13 }
  0x26   : > { %p800_p5 = pnand %p799_p3, %p793_p0 }
  0x9a   : > { %v293_v12 = vpop.permute.xlu0 %292  ;;  %v314_v14 = vpop.permute.xlu1 %313 }
  0x9b   : > { %v299_v16 = vsub.f32 %v293_v12, %v298_v11  ;;  %v320_v17 = vsub.f32 %v314_v14, %v319_v13 }
  0x9d   : > { %v300_v21 = vmul.f32 %v299_v16, %v299_v16  ;;  %v321_v23 = vmul.f32 %v320_v17, %v320_v17 }
  0x9f   : > { %v303_v18 = vpop.permute.xlu0 %302  ;;  %v327_v24 = vpop.permute.xlu1 %326 }
  0xa0   : > { %v309_v19 = vsub.f32 %v303_v18, %v308_v15  ;;  %vm328_vm0 = vcmp.eq.s32.totalorder %v327_v24, %v970_v20  ;;  %v286_v18 = vld [vmem:[%s282_s26] sm:$0xff] }
  0xa2   : > { %v310_v22 = vmul.f32 %v309_v19, %v309_v19  ;;  %v287_v19 = vld [vmem:[%s282_s26 + $0x8] sm:$0xff] }
  0xa4   : > { %v311_v25 = vadd.f32 %v310_v22, %v300_v21  ;;  %v714_v21 = vpack.c.bf16 %v287_v19, %v286_v18 }
  0xa6   : > { %v322_v26 = vadd.f32 %v321_v23, %v311_v25  ;;  %715 = vmatprep.subr.bf16.mxu0 %v714_v21  ;;  %722 = vmatprep.subr.bf16.mxu1 %v714_v21 }
  0xa7   : > { %717 = vmatpush3.bf16.msra.mxu0 %v714_v21  ;;  %724 = vmatpush3.bf16.msra.mxu1 %v714_v21 }
  0xa8   : > { %v329_v27 = vsel %vm328_vm0, inf, %v322_v26 }
  0xa9   : > { %v331_v28 = vsel %vm330_vm1, %v329_v27, inf }
  0xaa   : > { %332 = vmin.xlane.f32.xlu1 %v331_v28 }
 0x137   : > { %v333_v29 = vpop.xlane.xlu1 %332 }
 0x138   : > { %vm334_vm2 = vcmp.eq.f32.partialorder %v329_v27, %v333_v29  ;;  %v288_v29 = vld [vmem:[%s282_s26 + $0x10] sm:$0xff] }
 0x139   : > { %v335_v30 = vsel %vm334_vm2, %v970_v20, 32  ;;  %vm541_vm2 = vcmask 130048  }
 0x13a   : > { %v336_v31 = vsel %vm330_vm1, %v335_v30, 2147483647  ;;  %v289_v30 = vld [vmem:[%s282_s26 + $0x18] sm:$0xff] }
 0x13b   : > { %v338_v32 = vshra.s32 %v336_v31, 16  ;;  %v337_v34 = vand.u32 65535, %v336_v31  ;;  %v718_v31 = vpack.c.bf16 %v289_v30, %v288_v29 }
 0x13d   : > { %v340_v33 = vcvt.s32.f32 %v338_v32  ;;  %v339_v36 = vcvt.s32.f32 %v337_v34  ;;  %719 = vmatprep.subr.bf16.mxu0 %v718_v31  ;;  %723 = vmatprep.subr.bf16.mxu1 %v718_v31 }
 0x13e   : > { %721 = vmatpush3.bf16.msra.mxu0 %v718_v31  ;;  %725 = vmatpush3.bf16.msra.mxu1 %v718_v31 }
 0x13f   : > { %341 = vmin.xlane.f32.xlu0 %v340_v33 }
 0x1cc   : > { %v342_v35 = vpop.xlane.xlu0 %341 }
 0x1cd   : > { %vm343_vm3 = vcmp.eq.f32.partialorder %v340_v33, %v342_v35  ;;  %v348_v38 = vcvt.f32.s32 %v342_v35 }
 0x1ce   : > { %v344_v37 = vsel %vm343_vm3, %v339_v36, inf }
 0x1cf   : > { %345 = vmin.xlane.f32.xlu0 %v344_v37  ;;  %v349_v40 = vshll.u32 %v348_v38, 16 }
 0x25c   : > { %v346_v39 = vpop.xlane.xlu0 %345 }
 0x25d   : > { %v347_v41 = vcvt.f32.s32 %v346_v39 }
 0x25f   : > { %v350_v42 = vadd.s32 %v349_v40, %v347_v41 }
 0x261   : > { %vm351_vm4 = vcmp.eq.s32.totalorder %v350_v42, %v970_v20 }
 0x262   : > { %v352_v43 = vsel %vm351_vm4, inf, %v329_v27  ;;  %v873_v27 = vmov 0.0  }
 0x263   : > { %v353_v44 = vsel %vm330_vm1, %v352_v43, inf }
 0x264   : > { %354 = vmin.xlane.f32.xlu1 %v353_v44 }
 0x2f1   : > { %v355_v45 = vpop.xlane.xlu1 %354 }
 0x2f2   : > { %vm356_vm5 = vcmp.eq.f32.partialorder %v352_v43, %v355_v45 }
 0x2f3   : > { %v357_v46 = vsel %vm356_vm5, %v970_v20, 32 }
 0x2f4   : > { %v358_v47 = vsel %vm330_vm1, %v357_v46, 2147483647 }
 0x2f5   : > { %v360_v48 = vshra.s32 %v358_v47, 16  ;;  %v359_v50 = vand.u32 65535, %v358_v47 }
 0x2f7   : > { %v362_v49 = vcvt.s32.f32 %v360_v48  ;;  %v361_v52 = vcvt.s32.f32 %v359_v50 }
 0x2f9   : > { %363 = vmin.xlane.f32.xlu0 %v362_v49 }
 0x386   : > { %v364_v51 = vpop.xlane.xlu0 %363 }
 0x387   : > { %vm365_vm6 = vcmp.eq.f32.partialorder %v362_v49, %v364_v51  ;;  %v370_v54 = vcvt.f32.s32 %v364_v51 }
 0x388   : > { %v366_v53 = vsel %vm365_vm6, %v361_v52, inf }
 0x389   : > { %367 = vmin.xlane.f32.xlu1 %v366_v53  ;;  %v371_v56 = vshll.u32 %v370_v54, 16 }
 0x416   : > { %v368_v55 = vpop.xlane.xlu1 %367 }
 0x417   : > { %v369_v57 = vcvt.f32.s32 %v368_v55 }
 0x419   : > { %v372_v58 = vadd.s32 %v371_v56, %v369_v57 }
 0x41b   : > { %vm373_vm7 = vcmp.eq.s32.totalorder %v372_v58, %v970_v20 }
 0x41c   : > { %v374_v59 = vsel %vm373_vm7, inf, %v352_v43 }
 0x41d   : > { %v375_v60 = vsel %vm330_vm1, %v374_v59, inf }
 0x41e   : > { %376 = vmin.xlane.f32.xlu0 %v375_v60 }
 0x4ab   : > { %v377_v61 = vpop.xlane.xlu0 %376 }
 0x4ac   : > { %vm378_vm8 = vcmp.eq.f32.partialorder %v374_v59, %v377_v61 }
 0x4ad   : > { %v379_v62 = vsel %vm378_vm8, %v970_v20, 32 }
 0x4ae   : > { %v380_v63 = vsel %vm330_vm1, %v379_v62, 2147483647 }
 0x4af   : > { %v382_v0 = vshra.s32 %v380_v63, 16  ;;  %v381_v2 = vand.u32 65535, %v380_v63 }
 0x4b1   : > { %v384_v1 = vcvt.s32.f32 %v382_v0  ;;  %v383_v4 = vcvt.s32.f32 %v381_v2 }
 0x4b3   : > { %385 = vmin.xlane.f32.xlu1 %v384_v1 }
 0x540   : > { %v386_v3 = vpop.xlane.xlu1 %385 }
 0x541   : > { %vm387_vm9 = vcmp.eq.f32.partialorder %v384_v1, %v386_v3  ;;  %v392_v6 = vcvt.f32.s32 %v386_v3 }
 0x542   : > { %v388_v5 = vsel %vm387_vm9, %v383_v4, inf }
 0x543   : > { %389 = vmin.xlane.f32.xlu0 %v388_v5  ;;  %v393_v8 = vshll.u32 %v392_v6, 16 }
 0x5d0   : > { %v390_v7 = vpop.xlane.xlu0 %389 }
 0x5d1   : > { %v391_v9 = vcvt.f32.s32 %v390_v7 }
 0x5d3   : > { %v394_v10 = vadd.s32 %v393_v8, %v391_v9 }
 0x5d5   : > { %vm395_vm10 = vcmp.eq.s32.totalorder %v394_v10, %v970_v20 }
 0x5d6   : > { %v396_v11 = vsel %vm395_vm10, inf, %v374_v59 }
 0x5d7   : > { %v397_v12 = vsel %vm330_vm1, %v396_v11, inf }
 0x5d8   : > { %398 = vmin.xlane.f32.xlu1 %v397_v12 }
 0x665   : > { %v399_v13 = vpop.xlane.xlu1 %398 }
 0x666   : > { %vm400_vm11 = vcmp.eq.f32.partialorder %v396_v11, %v399_v13 }
 0x667   : > { %v401_v14 = vsel %vm400_vm11, %v970_v20, 32 }
 0x668   : > { %v402_v15 = vsel %vm330_vm1, %v401_v14, 2147483647 }
 0x669   : > { %v404_v16 = vshra.s32 %v402_v15, 16  ;;  %v403_v22 = vand.u32 65535, %v402_v15 }
 0x66b   : > { %v406_v17 = vcvt.s32.f32 %v404_v16  ;;  %v405_v24 = vcvt.s32.f32 %v403_v22 }
 0x66d   : > { %407 = vmin.xlane.f32.xlu0 %v406_v17 }
 0x683   : > { %418 = vperm.xlu0 %789, %v350_v42  }
 0x6fa   : > { %v408_v23 = vpop.xlane.xlu0 %407 }
 0x6fb   : > { %vm409_vm12 = vcmp.eq.f32.partialorder %v406_v17, %v408_v23  ;;  %v414_v32 = vcvt.f32.s32 %v408_v23 }
 0x6fc   : > { %v410_v25 = vsel %vm409_vm12, %v405_v24, inf }
 0x6fd   : > { %411 = vmin.xlane.f32.xlu1 %v410_v25  ;;  %v415_v34 = vshll.u32 %v414_v32, 16 }
 0x702   : > { %v419_v26 = vpop.permute.xlu0 %418 }
 0x703   : > { %vm429_vm13 = vcmp.eq.s32.totalorder %v419_v26, %v970_v20 }
 0x704   : > { %v679_v28 = vsel %vm429_vm13, 1.0, %v873_v27 }
 0x705   : > { %708 = vmatprep.mubr.msk.f32.mxu0 %vm330_vm1, %v679_v28 }
 0x70e   : > { %421 = vperm.xlu1 %788, %v372_v58  }
 0x712   : > { %424 = vperm.xlu1 %788, %v394_v10  }
 0x78a   : > { %v412_v33 = vpop.xlane.xlu1 %411 }
 0x78b   : > { %v413_v35 = vcvt.f32.s32 %v412_v33 }
 0x78d   : > { %v416_v36 = vadd.s32 %v415_v34, %v413_v35 }
 0x78e   : > { %v422_v37 = vpop.permute.xlu1 %421 }
 0x78f   : > { %vm430_vm14 = vcmp.eq.s32.totalorder %v422_v37, %v970_v20  ;;  %427 = vperm.xlu1 %788, %v416_v36  }
 0x790   : > { %v680_v38 = vsel %vm430_vm14, 1.0, %v873_v27 }
 0x791   : > { %709 = vmatmul.mubr.msk.f32.vlgmr.msra.gmra.mrb[0].mxu0 %vm330_vm1, %v680_v38 }
 0x792   : > { %v425_v39 = vpop.permute.xlu1 %424 }
 0x793   : > { %vm431_vm15 = vcmp.eq.s32.totalorder %v425_v39, %v970_v20 }
 0x794   : > { %v681_v40 = vsel %vm431_vm15, 1.0, %v873_v27 }
 0x795   : > { %711 = vmatprep.mubr.msk.f32.mxu1 %vm330_vm1, %v681_v40 }
 0x80e   : > { %v428_v41 = vpop.permute.xlu1 %427 }
 0x80f   : > { %vm432_vm0 = vcmp.eq.s32.totalorder %v428_v41, %v970_v20 }
 0x810   : > { %v682_v42 = vsel %vm432_vm0, 1.0, %v873_v27 }
 0x811   : > { %712 = vmatmul.mubr.msk.f32.vlgmr.msra.gmra.mrb[0].mxu1 %vm330_vm1, %v682_v42 }
 0x864   : > { %v710_v43 = vpop.f32.mrb[0].mxu0 }
 0x865   : > { %v519_v44 = vpop.f32.mrb[1].mxu0 }
 0x866   : > { %v538_v45 = vmax.f32 %v519_v44, %v710_v43 }
 0x8e4   : > { %v713_v46 = vpop.f32.mrb[0].mxu1 }
 0x8e5   : > { %v529_v47 = vpop.f32.mrb[1].mxu1 }
 0x8e6   : > { %v539_v48 = vmax.f32 %v538_v45, %v529_v47 }
 0x8e8   : > { %v540_v49 = vmax.f32 %v539_v48, %v713_v46 }
 0x8ea   : > { %542 = vst.msk [vmem:[%s259_s6] sm:$0xff] %vm541_vm2, %v540_v49 }
 0x8eb   : > { %803 = shalt.err (!%p800_p5)
}
 0x8ec   : > { %s804_s21 = scalar_lea.hbm %s1005_s10, 128  ;;  %s808_s26 = scalar_lea.hbm %s1056_s4, 256 }
 0x8ed   : > { %p805_p6 = scmp.ne.s32.totalorder %s1005_s10, %s804_s21  ;;  %p809_p10 = scmp.lt.u32.totalorder %s1005_s10, %s1056_s4 }
 0x8ee   : > { %p810_p11 = scmp.lt.u32.totalorder %s808_s26, %s804_s21  ;;  %p812_p13 = scmp.lt.u32.totalorder %s804_s21, %s1005_s10 }
 0x8ef   : > { %p806_p7 = pnand %p805_p6, %p940_p4 }
 0x8f0   : > { %p811_p12 = por %p810_p11, %p809_p10 }
 0x8f1   : > { %p807_p9 = pneg %p806_p7 }
 0x8f2   : > { %p813_p0 = por %p812_p13, %p811_p12 }
 0x8f4   : > { %p814_p1 = pnand %p813_p0, %p807_p9 }
 0x8f6   : > { %817 = shalt.err (!%p814_p1)
}
 0x8f7   : > { %726 = dma.vmem_to_hbm [thread:$0]  (%p940_p4), %s1007_s7, 128, %s1005_s10, %s544_s11  }
 0x8f8 PF: > { %p732_p2 = scmp.ge.s32.totalorder %s868_s20, 2  ;;  %s570_s5 = sand.u32 1, %s848_s15  }
 0x8f9   : > { %s571_s6 = scalar_lea.sflag [#allocation3], %s570_s5 }
 0x8fa   : > { %p729_p3 = pnand %p732_p2, %p947_p8 }
 0x8fc   : > { %843 = dma.done.wait (!%p729_p3), %s571_s6, 128  }
 0x8fd   : > { %845 = vsyncadd (!%p729_p3), %s571_s6, 4294967168  ;;  %s17_s20 = sadd.s32 1, %s868_s20   ;;  %s1059_s15 = smov %s852_s16 }
 0x8fe   : > { %p14_p5 = scmp.ge.s32.totalorder %s17_s20, 4   ;;  %s1060_s16 = smov %s856_s17 }
 0x8ff   : > { %s1061_s17 = smov %s953_s28  ;;  %s1062_s18 = smov %s864_s19 }
 0x900   : > { %s1063_s19 = smov %s1065_s23  ;;  %16 = sbr.rel (!%p14_p5) target bundleno = 4 (0x4), region = 80 }
 0x907   :  { %576 = vsyncpa [#allocation3], 1 }
 0x908   :  { %578 = vsyncpa [#allocation3 + $0x1], 1 }

</bundles_post_ra>
